<compile_context>
chip_gen: v5e
topology: v5e:2x2
jax: 0.10.0
libtpu: 0.0.40
codegen_flags: <defaults>
</compile_context>

<pallas_src>
import jax
import jax.numpy as jnp
from jax.experimental import pallas as pl
from jax.experimental.pallas import tpu as pltpu


def _round_up(x: int, m: int) -> int:
    return (x + m - 1) // m * m


# ----------------------------------------------------------------------------
# Kernel: fused Linear(+ReLU) chain, one batch tile per grid step.
# refs layout: (x_ref, w0, b0, w1, b1, ..., w{L-1}, b{L-1}, o_ref)
# ----------------------------------------------------------------------------
def _make_fused_mlp_kernel(num_layers: int):
    def kernel(*refs):
        x_ref = refs[0]
        o_ref = refs[-1]
        wb = refs[1:-1]

        # Cast activations to the matmul dtype in VMEM (no wrapper HBM pass).
        h = x_ref[...].astype(wb[0].dtype)            # [TB, Fin] bf16
        for li in range(num_layers):
            w_ref = wb[2 * li]
            b_ref = wb[2 * li + 1]
            # MXU matmul, f32 accumulate; bias broadcast over batch rows.
            y = jnp.dot(h, w_ref[...], preferred_element_type=jnp.float32)
            y = y + b_ref[...]                        # f32 epilogue
            if li < num_layers - 1:
                h = jnp.maximum(y, 0.0).astype(w_ref.dtype)   # ReLU, back to bf16
            else:
                h = y
        o_ref[...] = h.astype(o_ref.dtype)

    return kernel


# ----------------------------------------------------------------------------
# One-time parameter preparation (pad + cast), hoisted out of the forward.
# params: list of (w [din, dout] f32, b [dout] or [1, dout] f32)
# Layer 0's input dim stays unpadded (x arrives at native width); the final
# layer's output dim stays unpadded (lane-exact output stream); hidden dims are
# zero-padded to 128 lanes.  Bias pads are exactly 0 (required invariant).
# ----------------------------------------------------------------------------
def prepare_decoder_params(params, compute_dtype=jnp.bfloat16):
    n = len(params)
    dims = [params[0][0].shape[0]] + [w.shape[1] for (w, _) in params]
    layers = []
    for li, (w, b) in enumerate(params):
        din, dout = w.shape
        pin = din if li == 0 else _round_up(din, 128)
        pout = dout if li == n - 1 else _round_up(dout, 128)
        wp = jnp.pad(jnp.asarray(w).astype(compute_dtype),
                     ((0, pin - din), (0, pout - dout)))
        bp = jnp.pad(jnp.asarray(b, jnp.float32).reshape(1, -1),
                     ((0, 0), (0, pout - dout)))
        layers.append((wp, bp))
    return {"layers": layers, "dims": tuple(dims)}


# ----------------------------------------------------------------------------
# Forward pass: single fused pallas_call over batch tiles.
# ----------------------------------------------------------------------------
def decoder_forward(prepared, x, output_info=None, *, out_dtype=None,
                    batch_tile=2048):
    del output_info  # unused by the reference PyTorch forward

    layers = prepared["layers"]
    dims = prepared["dims"]
    n_layers = len(layers)

    B, Fin = x.shape
    assert Fin == dims[0], f"x width {Fin} != embedding_dim {dims[0]}"
    data_dim = dims[-1]
    compute_dtype = layers[0][0].dtype
    if out_dtype is None:
        out_dtype = compute_dtype

    # --- batch tiling ---------------------------------------------------------
    # Multiple of 16 (bf16 sublane packing).  Aim for >=2 grid steps so the
    # "parallel" axis spans both v7x TensorCores; cap the tile (default 2048)
    # to amortize the ~0.35us per-step cost while staying well under VMEM.
    B16 = _round_up(max(B, 1), 16)
    TB = min(int(batch_tile), max(16, _round_up(pl.cdiv(B16, 2), 16)))
    Bp = _round_up(B, TB)
    xp = x if Bp == B else jnp.pad(x, ((0, Bp - B), (0, 0)))

    # --- specs ----------------------------------------------------------------
    # x streams per batch tile at native width/dtype (block last dim == full dim).
    in_specs = [pl.BlockSpec((TB, Fin), lambda i: (i, 0))]
    flat_inputs = [xp]
    for wp, bp in layers:
        pin, pout = wp.shape
        # Full-array blocks with constant index_map -> VMEM-resident, no re-DMA.
        in_specs += [
            pl.BlockSpec((pin, pout), lambda i: (0, 0)),
            pl.BlockSpec((1, pout), lambda i: (0, 0)),
        ]
        flat_inputs += [wp, bp]

    out_specs = pl.BlockSpec((TB, data_dim), lambda i: (i, 0))

    # Advisory cost estimate with TRUE (unpadded) dims.
    flops = 2 * B * sum(dims[i] * dims[i + 1] for i in range(n_layers))
    bytes_accessed = (x.size * x.dtype.itemsize
                      + sum(a.size * a.dtype.itemsize for a in flat_inputs[1:])
                      + B * data_dim * jnp.dtype(out_dtype).itemsize)

    # Only raise the scoped-VMEM limit if a caller pushes past the safe default
    # tile (v5e default limit is 16 MiB); 48 MiB stays under v7x's 64 MiB VMEM.
    vmem_limit = (48 * 1024 * 1024) if TB > 2048 else None

    out = pl.pallas_call(
        _make_fused_mlp_kernel(n_layers),
        out_shape=jax.ShapeDtypeStruct((Bp, data_dim), out_dtype),
        grid_spec=pltpu.PrefetchScalarGridSpec(
            num_scalar_prefetch=0,
            grid=(Bp // TB,),
            in_specs=in_specs,
            out_specs=out_specs,
        ),
        compiler_params=pltpu.CompilerParams(
            dimension_semantics=("parallel",),   # batch tiles independent
            vmem_limit_bytes=vmem_limit,
        ),
        cost_estimate=pl.CostEstimate(
            flops=flops, transcendentals=0, bytes_accessed=bytes_accessed),
    )(*flat_inputs)

    return out if Bp == B else out[:B]


# ----------------------------------------------------------------------------
# Init + pure-JAX reference (same bf16-matmul / f32-accumulate recipe).
# ----------------------------------------------------------------------------
def init_decoder_params(key, embedding_dim, decompress_dims, data_dim):
    """PyTorch-Linear-shaped init (uniform +-1/sqrt(fan_in)); W stored
    [in_features, out_features] so the kernel computes x @ W + b."""
    dims = [embedding_dim] + list(decompress_dims) + [data_dim]
    params = []
    for din, dout in zip(dims[:-1], dims[1:]):
        key, kw, kb = jax.random.split(key, 3)
        bound = 1.0 / float(jnp.sqrt(jnp.float32(din)))
        w = jax.random.uniform(kw, (din, dout), jnp.float32, -bound, bound)
        b = jax.random.uniform(kb, (dout,), jnp.float32, -bound, bound)
        params.append((w, b))
    return params


def decoder_forward_ref(params, x, compute_dtype=jnp.bfloat16, out_dtype=None):
    n = len(params)
    if out_dtype is None:
        out_dtype = compute_dtype
    h = x.astype(compute_dtype)
    for i, (w, b) in enumerate(params):
        y = jnp.dot(h, w.astype(compute_dtype),
                    preferred_element_type=jnp.float32)
        y = y + jnp.asarray(b, jnp.float32).reshape(1, -1)
        if i < n - 1:
            h = jnp.maximum(y, 0.0).astype(compute_dtype)
        else:
            h = y
    return h.astype(out_dtype)


if __name__ == "__main__":
    embedding_dim = 32
    decompress_dims = (64, 96)
    data_dim = 48
    batch = 8

    key = jax.random.PRNGKey(0)
    key, kx, kp = jax.random.split(key, 3)

    x = jax.random.normal(kx, (batch, embedding_dim), jnp.float32)
    params = init_decoder_params(kp, embedding_dim, decompress_dims, data_dim)

    prepared = prepare_decoder_params(params)          # one-time pad + cast
    out = decoder_forward(prepared, x, output_info=None)
    out = jax.block_until_ready(out)

    ref = decoder_forward_ref(params, x)
    assert out.shape == (batch, data_dim), out.shape
    err = jnp.max(jnp.abs(out.astype(jnp.float32) - ref.astype(jnp.float32)))
    assert jnp.allclose(out.astype(jnp.float32), ref.astype(jnp.float32),
                        atol=1e-2, rtol=1e-2), f"max abs err = {err}"

    print("KERNEL_OK")
</pallas_src>

<mosaic_0001>
module attributes {stable_mosaic.version = 11 : i64} {
  func.func @kernel(%arg0: i32, %arg1: memref<16x32xf32, #tpu.memory_space<vmem>>, %arg2: memref<32x128xbf16, #tpu.memory_space<vmem>>, %arg3: memref<1x128xf32, #tpu.memory_space<vmem>>, %arg4: memref<128x128xbf16, #tpu.memory_space<vmem>>, %arg5: memref<1x128xf32, #tpu.memory_space<vmem>>, %arg6: memref<128x48xbf16, #tpu.memory_space<vmem>>, %arg7: memref<1x48xf32, #tpu.memory_space<vmem>>, %arg8: memref<16x48xbf16, #tpu.memory_space<vmem>>) attributes {dimension_semantics = [#tpu.dimension_semantics<parallel>], iteration_bounds = array<i64: 1>, scalar_prefetch = 0 : i64, scratch_operands = 0 : i64, tpu.core_type = #tpu.core_type<tc>, window_params = [{transform_indices = @transform_0, window_bounds = array<i64: 16, 32>}, {pipeline_mode = #tpu.pipeline_mode<synchronous>, transform_indices = @transform_1, window_bounds = array<i64: 32, 128>}, {pipeline_mode = #tpu.pipeline_mode<synchronous>, transform_indices = @transform_2, window_bounds = array<i64: 1, 128>}, {pipeline_mode = #tpu.pipeline_mode<synchronous>, transform_indices = @transform_3, window_bounds = array<i64: 128, 128>}, {pipeline_mode = #tpu.pipeline_mode<synchronous>, transform_indices = @transform_4, window_bounds = array<i64: 1, 128>}, {pipeline_mode = #tpu.pipeline_mode<synchronous>, transform_indices = @transform_5, window_bounds = array<i64: 128, 48>}, {pipeline_mode = #tpu.pipeline_mode<synchronous>, transform_indices = @transform_6, window_bounds = array<i64: 1, 48>}, {transform_indices = @transform_7, window_bounds = array<i64: 16, 48>}]} {
    %c0 = arith.constant 0 : index
    %c0_0 = arith.constant 0 : index
    %0 = vector.load %arg1[%c0, %c0_0] : memref<16x32xf32, #tpu.memory_space<vmem>>, vector<16x32xf32>
    %1 = arith.truncf %0 : vector<16x32xf32> to vector<16x32xbf16>
    %c0_1 = arith.constant 0 : index
    %c0_2 = arith.constant 0 : index
    %2 = vector.load %arg2[%c0_1, %c0_2] : memref<32x128xbf16, #tpu.memory_space<vmem>>, vector<32x128xbf16>
    %cst = arith.constant dense<0.000000e+00> : vector<16x128xf32>
    %3 = tpu.matmul %1, %2, %cst {dimension_numbers = #tpu.dot_dimension_numbers<[1], [0], [0], [1], [0, 0, 1, 1], [], []>} : vector<16x32xbf16>, vector<32x128xbf16>, vector<16x128xf32> -> vector<16x128xf32>
    %c0_3 = arith.constant 0 : index
    %c0_4 = arith.constant 0 : index
    %4 = vector.load %arg3[%c0_3, %c0_4] : memref<1x128xf32, #tpu.memory_space<vmem>>, vector<1x128xf32>
    %5 = vector.broadcast %4 : vector<1x128xf32> to vector<16x128xf32>
    %6 = arith.addf %3, %5 : vector<16x128xf32>
    %cst_5 = arith.constant 0.000000e+00 : f32
    %7 = vector.broadcast %cst_5 : f32 to vector<16x128xf32>
    %8 = arith.maximumf %6, %7 : vector<16x128xf32>
    %9 = arith.truncf %8 : vector<16x128xf32> to vector<16x128xbf16>
    %c0_6 = arith.constant 0 : index
    %c0_7 = arith.constant 0 : index
    %10 = vector.load %arg4[%c0_6, %c0_7] : memref<128x128xbf16, #tpu.memory_space<vmem>>, vector<128x128xbf16>
    %cst_8 = arith.constant dense<0.000000e+00> : vector<16x128xf32>
    %11 = tpu.matmul %9, %10, %cst_8 {dimension_numbers = #tpu.dot_dimension_numbers<[1], [0], [0], [1], [0, 0, 1, 1], [], []>} : vector<16x128xbf16>, vector<128x128xbf16>, vector<16x128xf32> -> vector<16x128xf32>
    %c0_9 = arith.constant 0 : index
    %c0_10 = arith.constant 0 : index
    %12 = vector.load %arg5[%c0_9, %c0_10] : memref<1x128xf32, #tpu.memory_space<vmem>>, vector<1x128xf32>
    %13 = vector.broadcast %12 : vector<1x128xf32> to vector<16x128xf32>
    %14 = arith.addf %11, %13 : vector<16x128xf32>
    %cst_11 = arith.constant 0.000000e+00 : f32
    %15 = vector.broadcast %cst_11 : f32 to vector<16x128xf32>
    %16 = arith.maximumf %14, %15 : vector<16x128xf32>
    %17 = arith.truncf %16 : vector<16x128xf32> to vector<16x128xbf16>
    %c0_12 = arith.constant 0 : index
    %c0_13 = arith.constant 0 : index
    %18 = vector.load %arg6[%c0_12, %c0_13] : memref<128x48xbf16, #tpu.memory_space<vmem>>, vector<128x48xbf16>
    %cst_14 = arith.constant dense<0.000000e+00> : vector<16x48xf32>
    %19 = tpu.matmul %17, %18, %cst_14 {dimension_numbers = #tpu.dot_dimension_numbers<[1], [0], [0], [1], [0, 0, 1, 1], [], []>} : vector<16x128xbf16>, vector<128x48xbf16>, vector<16x48xf32> -> vector<16x48xf32>
    %c0_15 = arith.constant 0 : index
    %c0_16 = arith.constant 0 : index
    %20 = vector.load %arg7[%c0_15, %c0_16] : memref<1x48xf32, #tpu.memory_space<vmem>>, vector<1x48xf32>
    %21 = vector.broadcast %20 : vector<1x48xf32> to vector<16x48xf32>
    %22 = arith.addf %19, %21 : vector<16x48xf32>
    %23 = arith.truncf %22 : vector<16x48xf32> to vector<16x48xbf16>
    %c0_17 = arith.constant 0 : index
    %c0_18 = arith.constant 0 : index
    %24 = vector.load %arg8[%c0_17, %c0_18] : memref<16x48xbf16, #tpu.memory_space<vmem>>, vector<16x48xbf16>
    tpu.vector_store %arg8[%c0_17, %c0_18], %23 {strides = array<i32>} : memref<16x48xbf16, #tpu.memory_space<vmem>>, vector<16x48xbf16>,
    return
  }
  func.func @transform_0(%arg0: i32) -> (i32, i32) {
    %c0_i32 = arith.constant 0 : i32
    %c0_i32_0 = arith.constant 0 : i32
    return %arg0, %c0_i32 : i32, i32
  }
  func.func @transform_1(%arg0: i32) -> (i32, i32) {
    %c0_i32 = arith.constant 0 : i32
    %c0_i32_0 = arith.constant 0 : i32
    %c0_i32_1 = arith.constant 0 : i32
    return %c0_i32, %c0_i32_0 : i32, i32
  }
  func.func @transform_2(%arg0: i32) -> (i32, i32) {
    %c0_i32 = arith.constant 0 : i32
    %c0_i32_0 = arith.constant 0 : i32
    %c0_i32_1 = arith.constant 0 : i32
    return %c0_i32, %c0_i32_0 : i32, i32
  }
  func.func @transform_3(%arg0: i32) -> (i32, i32) {
    %c0_i32 = arith.constant 0 : i32
    %c0_i32_0 = arith.constant 0 : i32
    %c0_i32_1 = arith.constant 0 : i32
    return %c0_i32, %c0_i32_0 : i32, i32
  }
  func.func @transform_4(%arg0: i32) -> (i32, i32) {
    %c0_i32 = arith.constant 0 : i32
    %c0_i32_0 = arith.constant 0 : i32
    %c0_i32_1 = arith.constant 0 : i32
    return %c0_i32, %c0_i32_0 : i32, i32
  }
  func.func @transform_5(%arg0: i32) -> (i32, i32) {
    %c0_i32 = arith.constant 0 : i32
    %c0_i32_0 = arith.constant 0 : i32
    %c0_i32_1 = arith.constant 0 : i32
    return %c0_i32, %c0_i32_0 : i32, i32
  }
  func.func @transform_6(%arg0: i32) -> (i32, i32) {
    %c0_i32 = arith.constant 0 : i32
    %c0_i32_0 = arith.constant 0 : i32
    %c0_i32_1 = arith.constant 0 : i32
    return %c0_i32, %c0_i32_0 : i32, i32
  }
  func.func @transform_7(%arg0: i32) -> (i32, i32) {
    %c0_i32 = arith.constant 0 : i32
    %c0_i32_0 = arith.constant 0 : i32
    return %arg0, %c0_i32 : i32, i32
  }
}

</mosaic_0001>

<bundles_post_ra>
// kernel: tpu_custom_call.1
= control target key start
LH: loop header
LB: loop body
LE: loop exit
PB: predicated region body
PF: predicated region fallthrough
CT: control target
= control target key end

     0   :  { %12 = vsyncpa [#allocation3], 0  ;;  %s548_s0 = inlined_call_operand.vmem [shape: f32[16,32], index: 0, kind: input, shape index: {}]   ;;  %s549_s1 = inlined_call_operand.hbm [shape: bf16[32,128], index: 1, kind: input, shape index: {}]   ;;  %s550_s2 = inlined_call_operand.vmem [shape: f32[1,128], index: 2, kind: input, shape index: {}]   ;;  %s551_s3 = inlined_call_operand.vmem [shape: bf16[128,128], index: 3, kind: input, shape index: {}]   ;;  %s552_s4 = inlined_call_operand.vmem [shape: f32[1,128], index: 4, kind: input, shape index: {}]   ;;  %s553_s5 = inlined_call_operand.vmem [shape: bf16[128,48], index: 5, kind: input, shape index: {}]   ;;  %s554_s6 = inlined_call_operand.vmem [shape: f32[1,48], index: 6, kind: input, shape index: {}]   ;;  %s555_s7 = inlined_call_operand.hbm [shape: bf16[16,48], index: 7, kind: output, shape index: {}]  }
   0x1   :  { %13 = vsyncpa [#allocation4], 0  ;;  %s20_s26 = sshll.u32 %s549_s1, 4  ;;  %s429_s27 = smov [#allocation2]   ;;  %s21_s26 = int_to_ptr.hbm [resolvable:$true] %s20_s26 }
   0x2   :  { %s22_s28 = sshll.u32 %s429_s27, 4  ;;  %s430_s29 = smov 64   ;;  %s23_s28 = int_to_ptr.vmem [resolvable:$true] %s22_s28 }
   0x3   :  { %s431_s30 = smov 4  }
   0x4   :  { %28 = dma.hbm_to_vmem [thread:$0]  %s21_s26, 256, %s23_s28, [#allocation3], %s430_s29, %s430_s29, %s431_s30  }
   0x5   :  { %425 = dma.done.wait [#allocation3], 256  }
   0x6   :  { %426 = vsyncadd [#allocation3], 4294967040  ;;  %v353_v0 = vld [vmem:[#allocation2 + $0x8] sm:$0xff]  ;;  %v352_v1 = vld [vmem:[#allocation2] sm:$0xff]  ;;  %vm67_vm0 = vcmask 261120   ;;  %vm257_vm1 = vcmask 388096  }
   0x7   :  { %v361_v2 = vld [vmem:[%s551_s3 + $0x38] sm:$0xff]  ;;  %77 = vmatpush.bf16.msra.mxu0 %v353_v0  ;;  %v44_v3 = vld [vmem:[%s548_s0] sm:$0xff]  ;;  %v45_v4 = vld [vmem:[%s548_s0 + $0x8] sm:$0xff]  ;;  %s266_s25 = sshll.u32 %s555_s7, 4  ;;  %s267_s25 = int_to_ptr.hbm [resolvable:$true] %s266_s25 }
   0x8   :  { %156 = vmatpush.bf16.msra.mxu1 %v361_v2  ;;  %v360_v5 = vld [vmem:[%s551_s3 + $0x30] sm:$0xff]  ;;  %v46_v6 = vpack.c.bf16 %v45_v4, %v44_v3  ;;  %v359_v7 = vld [vmem:[%s551_s3 + $0x28] sm:$0xff]  ;;  %v358_v8 = vld [vmem:[%s551_s3 + $0x20] sm:$0xff] }
   0x9   :  { %v357_v9 = vld [vmem:[%s551_s3 + $0x18] sm:$0xff]  ;;  %v356_v10 = vld [vmem:[%s551_s3 + $0x10] sm:$0xff]  ;;  %v355_v11 = vld [vmem:[%s551_s3 + $0x8] sm:$0xff] }
   0xa   :  { %v354_v12 = vld [vmem:[%s551_s3] sm:$0xff]  ;;  %v369_v13 = vld [vmem:[%s553_s5 + $0x38] sm:$0xff]  ;;  %v368_v14 = vld [vmem:[%s553_s5 + $0x30] sm:$0xff] }
   0xb   :  { %78 = vmatpush.bf16.msra.mxu0 %v352_v1  ;;  %241 = vmatpush.bf16.msra.mxu2 %v369_v13  ;;  %v367_v15 = vld [vmem:[%s553_s5 + $0x28] sm:$0xff]  ;;  %v366_v16 = vld [vmem:[%s553_s5 + $0x20] sm:$0xff]  ;;  %v365_v25 = vld [vmem:[%s553_s5 + $0x18] sm:$0xff] }
   0xc   :  { %157 = vmatpush.bf16.msra.mxu1 %v360_v5  ;;  %v374_v18 = vld [vmem:[%s550_s2] ss:$0 sm:$0xff]  ;;  %v364_v26 = vld [vmem:[%s553_s5 + $0x10] sm:$0xff]  ;;  %v363_v27 = vld [vmem:[%s553_s5 + $0x8] sm:$0xff] }
   0xd   :  { %v362_v28 = vld [vmem:[%s553_s5] sm:$0xff]  ;;  %s432_s5 = smov [#allocation5]  }
   0xe   :  { %287 = vmatmul.msk.bf16.vlgmr.msra.gmra.mxu0 %vm67_vm0, %v46_v6  ;;  %v375_v30 = vld [vmem:[%s552_s4] ss:$0 sm:$0xff]  ;;  %s264_s23 = sshll.u32 %s432_s5, 4  ;;  %s265_s23 = int_to_ptr.vmem [resolvable:$true] %s264_s23 }
   0xf   :  { %242 = vmatpush.bf16.msra.mxu2 %v368_v14  ;;  %v376_v37 = vld [vmem:[%s554_s6] ss:$0 sm:$0xff] }
  0x10   :  { %158 = vmatpush.bf16.msra.mxu1 %v359_v7 }
  0x13   :  { %243 = vmatpush.bf16.msra.mxu2 %v367_v15 }
  0x14   :  { %159 = vmatpush.bf16.msra.mxu1 %v358_v8 }
  0x17   :  { %244 = vmatpush.bf16.msra.mxu2 %v366_v16 }
  0x18   :  { %160 = vmatpush.bf16.msra.mxu1 %v357_v9 }
  0x1b   :  { %245 = vmatpush.bf16.msra.mxu2 %v365_v25 }
  0x1c   :  { %161 = vmatpush.bf16.msra.mxu1 %v356_v10 }
  0x1f   :  { %246 = vmatpush.bf16.msra.mxu2 %v364_v26 }
  0x20   :  { %162 = vmatpush.bf16.msra.mxu1 %v355_v11 }
  0x23   :  { %247 = vmatpush.bf16.msra.mxu2 %v363_v27 }
  0x24   :  { %163 = vmatpush.bf16.msra.mxu1 %v354_v12 }
  0x27   :  { %248 = vmatpush.bf16.msra.mxu2 %v362_v28 }
  0x8b   :  { %v80_v17 = vpop.f32.mrf.mxu0 }
  0x8c   :  { %v81_v19 = vadd.f32 %v374_v18, %v80_v17 }
  0x8e   :  { %v85_v22 = vmax.f32 %v81_v19, 0.0 }
  0x93   :  { %v82_v20 = vpop.f32.mrf.mxu0 }
  0x94   :  { %v83_v21 = vadd.f32 %v374_v18, %v82_v20 }
  0x96   :  { %v86_v23 = vmax.f32 %v83_v21, 0.0 }
  0x98   :  { %v87_v24 = vpack.c.bf16 %v86_v23, %v85_v22 }
  0x9a   :  { %164 = vmatmul.bf16.vlgmr.msra.gmra.mxu1 %v87_v24 }
 0x117   :  { %v165_v29 = vpop.f32.mrf.mxu1 }
 0x118   :  { %v166_v31 = vadd.f32 %v375_v30, %v165_v29 }
 0x11a   :  { %v170_v34 = vmax.f32 %v166_v31, 0.0 }
 0x11f   :  { %v167_v32 = vpop.f32.mrf.mxu1 }
 0x120   :  { %v168_v33 = vadd.f32 %v375_v30, %v167_v32 }
 0x122   :  { %v171_v35 = vmax.f32 %v168_v33, 0.0 }
 0x124   :  { %v172_v36 = vpack.c.bf16 %v171_v35, %v170_v34 }
 0x126   :  { %249 = vmatmul.bf16.vlgmr.msra.gmra.mxu2 %v172_v36 }
 0x1a9   :  { %v250_v38 = vpop.f32.mrf.mxu2 }
 0x1aa   :  { %v251_v39 = vadd.f32 %v376_v37, %v250_v38 }
 0x1ac   :  { %v255_v40 = vpack.c.bf16 %v251_v39, %v251_v39 }
 0x1ae   :  { %258 = vst.msk [vmem:[#allocation5] sm:$0xf] %vm257_vm1, %v255_v40 }
 0x1b1   :  { %v252_v41 = vpop.f32.mrf.mxu2 }
 0x1b2   :  { %v253_v42 = vadd.f32 %v376_v37, %v252_v41 }
 0x1b4   :  { %v256_v43 = vpack.c.bf16 %v253_v42, %v253_v42 }
 0x1b6   :  { %259 = vst.msk [vmem:[#allocation5 + $0x4] sm:$0xf] %vm257_vm1, %v256_v43 }
 0x1b7   :  { %272 = dma.vmem_to_hbm [thread:$0]  %s265_s23, 128, %s267_s25, [#allocation4], %s430_s29, %s430_s29, %s431_s30  }
 0x1b8   :  { %427 = dma.done.wait [#allocation4], 128  }
 0x1b9   :  { %428 = vsyncadd [#allocation4], 4294967168 }
 0x1ba   :  { %277 = vsyncpa [#allocation3], 1 }
 0x1bb   :  { %278 = vsyncpa [#allocation4], 1 }

</bundles_post_ra>
